<compile_context>
chip_gen: v5e
topology: v5e:2x2
jax: 0.10.0
libtpu: 0.0.40
codegen_flags: <defaults>
</compile_context>

<pallas_src>
import jax
import jax.numpy as jnp
from jax import lax
from jax.experimental import pallas as pl
from jax.experimental.pallas import tpu as pltpu

_LANES = 128
_C1 = (0.01 * 2) ** 2
_C2 = (0.03 * 2) ** 2
_N_MOMENTS = 6  # sum(x), sum(y), sum(x^2), sum(y^2), sum(x*y), sum(|x-y|)


def _make_moment_kernel(R, N_true, tn, n_inner, needs_mask):
    n_chunks = tn // _LANES

    def tile_moments(x_ref, y_ref, base, masked):
        """Partial moments of one (R, tn) tile, chunked 128 lanes at a time."""
        lane_ids = (lax.broadcasted_iota(jnp.int32, (R, _LANES), 1)
                    if masked else None)
        # Two interleaved accumulator sets to break the add dependence chain.
        acc = [[jnp.zeros((R, _LANES), jnp.float32) for _ in range(_N_MOMENTS)]
               for _ in range(2)]
        for k in range(n_chunks):
            off = k * _LANES
            # Chunk loads straight from the VMEM ref; per-chunk temporaries
            # stay in vregs (no (R, tn)-sized intermediates).
            xc = x_ref[:, off:off + _LANES].astype(jnp.float32)
            yc = y_ref[:, off:off + _LANES].astype(jnp.float32)
            if masked:
                valid = (base + off) + lane_ids < N_true
                xc = jnp.where(valid, xc, 0.0)
                yc = jnp.where(valid, yc, 0.0)
            a = acc[k & 1]
            a[0] = a[0] + xc
            a[1] = a[1] + yc
            a[2] = a[2] + xc * xc
            a[3] = a[3] + yc * yc
            a[4] = a[4] + xc * yc
            a[5] = a[5] + jnp.abs(xc - yc)
        return [acc[0][m] + acc[1][m] for m in range(_N_MOMENTS)]

    def kernel(x_ref, y_ref, out_ref):
        p = pl.program_id(0)
        j = pl.program_id(1)

        @pl.when(j == 0)
        def _init():
            out_ref[...] = jnp.zeros_like(out_ref)

        gt = p * n_inner + j          # intended global lane-tile index
        base = gt * tn                # intended global lane offset of tile start

        def add_tile(masked):
            parts = tile_moments(x_ref, y_ref, base, masked)
            for m in range(_N_MOMENTS):
                out_ref[m] += parts[m]   # one RMW per slab per tile

        if needs_mask:
            full_tiles = N_true // tn  # tiles with gt < full_tiles never overhang

            @pl.when(gt < full_tiles)
            def _in_bounds():
                add_tile(False)

            @pl.when(gt >= full_tiles)
            def _ragged():
                add_tile(True)
        else:
            add_tile(False)

    return kernel


def combined_loss(pred, target, mse_weight=1.0, l1_weight=0.5, ssim_weight=0.5,
                  num_core_groups=2, vmem_input_budget_bytes=12 << 20,
                  max_chunks_per_tile=256):
    """pred, target: (B, C, H, W) arrays (NCHW, as in PyTorch). f32 or bf16."""
    assert pred.shape == target.shape and pred.ndim == 4
    B, C, H, W = pred.shape
    R, N = B * C, H * W
    itemsize = jnp.dtype(pred.dtype).itemsize

    x2d = pred.reshape(R, N)
    y2d = target.reshape(R, N)

    # ---- lane-tile sizing from the VMEM budget ------------------------------
    # 2 inputs x 2 pipeline buffers of (R, tn) in the *input* dtype, plus the
    # resident (6, R, 128) f32 accumulator block.
    out_block_bytes = 2 * _N_MOMENTS * R * _LANES * 4
    in_budget = max(1 << 20, vmem_input_budget_bytes - out_block_bytes)
    lanes_budget = in_budget // (4 * R * itemsize)
    n_round = -(-N // _LANES) * _LANES
    tn = min(lanes_budget, max_chunks_per_tile * _LANES, n_round)
    tn = max(_LANES, (tn // _LANES) * _LANES)

    n_tiles = -(-N // tn)
    P = max(1, min(num_core_groups, n_tiles))
    n_inner = -(-n_tiles // P)
    needs_mask = (P * n_inner * tn) != N

    # If n_tiles is not a multiple of P, the trailing "extra" tiles are clamped
    # onto the last valid block (safe DMA); their contribution is fully masked
    # out inside the kernel (their intended lane offsets are >= N).
    if P * n_inner > n_tiles:
        last_blk = n_tiles - 1
        in_map = lambda p, j: (0, jnp.minimum(p * n_inner + j, last_blk))
    else:
        in_map = lambda p, j: (0, p * n_inner + j)

    kernel = _make_moment_kernel(R, N, tn, n_inner, needs_mask)

    vmem_limit = int(2 * 2 * R * tn * itemsize + out_block_bytes + (4 << 20))

    moments = pl.pallas_call(
        kernel,
        out_shape=jax.ShapeDtypeStruct((P, _N_MOMENTS, R, _LANES), jnp.float32),
        grid=(P, n_inner),
        in_specs=[pl.BlockSpec((R, tn), in_map),
                  pl.BlockSpec((R, tn), in_map)],
        out_specs=pl.BlockSpec((None, _N_MOMENTS, R, _LANES),
                               lambda p, j: (p, 0, 0, 0)),
        compiler_params=pltpu.CompilerParams(
            dimension_semantics=("parallel", "arbitrary"),
            vmem_limit_bytes=vmem_limit),
    )(x2d, y2d)

    # ---- tiny O(R) epilogue in plain JAX ------------------------------------
    row = jnp.sum(moments, axis=(0, 3))            # (6, R): combine cores + lanes
    sx, sy, sxx, syy, sxy, sad = (row[m] for m in range(_N_MOMENTS))

    inv_n = 1.0 / float(N)
    mu_x = sx * inv_n
    mu_y = sy * inv_n
    var_x = sxx * inv_n - mu_x * mu_x              # var, unbiased=False
    var_y = syy * inv_n - mu_y * mu_y
    cov_xy = sxy * inv_n - mu_x * mu_y

    ssim = ((2.0 * mu_x * mu_y + _C1) * (2.0 * cov_xy + _C2)) / (
        (mu_x * mu_x + mu_y * mu_y + _C1) * (var_x + var_y + _C2))
    ssim_loss = 1.0 - jnp.mean(ssim)

    inv_total = 1.0 / float(R * N)
    mse = (jnp.sum(sxx) - 2.0 * jnp.sum(sxy) + jnp.sum(syy)) * inv_total
    l1 = jnp.sum(sad) * inv_total

    total = mse_weight * mse + l1_weight * l1 + ssim_weight * ssim_loss
    return {"total": total, "mse": mse, "l1": l1, "ssim": ssim_loss}


def _reference_combined_loss(pred, target, mse_weight=1.0, l1_weight=0.5,
                             ssim_weight=0.5):
    # Pure-JAX reference mirroring the PyTorch module, for verification.
    pred = pred.astype(jnp.float32)
    target = target.astype(jnp.float32)
    diff = pred - target
    mse = jnp.mean(diff * diff)
    l1 = jnp.mean(jnp.abs(diff))
    mu_x = jnp.mean(pred, axis=(2, 3), keepdims=True)
    mu_y = jnp.mean(target, axis=(2, 3), keepdims=True)
    sigma_x = jnp.var(pred, axis=(2, 3), keepdims=True)
    sigma_y = jnp.var(target, axis=(2, 3), keepdims=True)
    sigma_xy = jnp.mean((pred - mu_x) * (target - mu_y), axis=(2, 3),
                        keepdims=True)
    ssim = ((2 * mu_x * mu_y + _C1) * (2 * sigma_xy + _C2)) / (
        (mu_x ** 2 + mu_y ** 2 + _C1) * (sigma_x + sigma_y + _C2))
    ssim_loss = 1.0 - jnp.mean(ssim)
    total = mse_weight * mse + l1_weight * l1 + ssim_weight * ssim_loss
    return total, mse, l1, ssim_loss


def _check(pred, target, **kwargs):
    result = combined_loss(pred, target, **kwargs)
    jax.block_until_ready(result["total"])
    ref = _reference_combined_loss(pred, target)
    for name, val in zip(("total", "mse", "l1", "ssim"), ref):
        assert jnp.allclose(result[name], val, rtol=1e-5, atol=1e-5), (
            name, result[name], val)
    return result


if __name__ == "__main__":
    key = jax.random.PRNGKey(0)
    k1, k2, k3, k4 = jax.random.split(key, 4)

    # Primary small-shape check (single tile, no masking).
    B, C, H, W = 2, 4, 16, 16
    pred = jax.random.normal(k1, (B, C, H, W), dtype=jnp.float32)
    target = jax.random.normal(k2, (B, C, H, W), dtype=jnp.float32)
    _check(pred, target)

    # Exercise the ragged-tile masking + multi-tile + "parallel" outer axis
    # paths (H*W = 480 not a multiple of the 128-lane tile).
    pred2 = jax.random.normal(k3, (2, 4, 24, 20), dtype=jnp.float32)
    target2 = jax.random.normal(k4, (2, 4, 24, 20), dtype=jnp.float32)
    _check(pred2, target2, num_core_groups=2, max_chunks_per_tile=1)

    print("KERNEL_OK")
</pallas_src>

<mosaic_0001>
module attributes {stable_mosaic.version = 11 : i64} {
  func.func @kernel(%arg0: i32, %arg1: i32, %arg2: memref<8x256xf32, #tpu.memory_space<vmem>>, %arg3: memref<8x256xf32, #tpu.memory_space<vmem>>, %arg4: memref<1x6x8x128xf32, #tpu.memory_space<vmem>>) attributes {dimension_semantics = [#tpu.dimension_semantics<parallel>, #tpu.dimension_semantics<arbitrary>], iteration_bounds = array<i64: 1, 1>, scalar_prefetch = 0 : i64, scratch_operands = 0 : i64, tpu.core_type = #tpu.core_type<tc>, window_params = [{transform_indices = @transform_0, window_bounds = array<i64: 8, 256>}, {transform_indices = @transform_1, window_bounds = array<i64: 8, 256>}, {transform_indices = @transform_2, window_bounds = array<i64: 1, 6, 8, 128>}]} {
    %c0_i32 = arith.constant 0 : i32
    %0 = arith.cmpi eq, %arg1, %c0_i32 : i32
    %1 = arith.extui %0 : i1 to i32
    %c0_i32_0 = arith.constant 0 : i32
    %2 = arith.cmpi ne, %1, %c0_i32_0 : i32
    scf.if %2 {
      %cst_61 = arith.constant 0.000000e+00 : f32
      %83 = vector.broadcast %cst_61 : f32 to vector<6x8x128xf32>
      %c0_62 = arith.constant 0 : index
      %c0_63 = arith.constant 0 : index
      %c0_64 = arith.constant 0 : index
      %c0_65 = arith.constant 0 : index
      %84 = vector.load %arg4[%c0_62, %c0_63, %c0_64, %c0_65] : memref<1x6x8x128xf32, #tpu.memory_space<vmem>>, vector<1x6x8x128xf32>
      %85 = vector.shape_cast %84 : vector<1x6x8x128xf32> to vector<6x8x128xf32>
      %86 = vector.shape_cast %83 : vector<6x8x128xf32> to vector<1x6x8x128xf32>
      tpu.vector_store %arg4[%c0_62, %c0_63, %c0_64, %c0_65], %86 {strides = array<i32>} : memref<1x6x8x128xf32, #tpu.memory_space<vmem>>, vector<1x6x8x128xf32>,
    } else {
    }
    %cst = arith.constant 0.000000e+00 : f32
    %3 = vector.broadcast %cst : f32 to vector<8x128xf32>
    %cst_1 = arith.constant 0.000000e+00 : f32
    %4 = vector.broadcast %cst_1 : f32 to vector<8x128xf32>
    %cst_2 = arith.constant 0.000000e+00 : f32
    %5 = vector.broadcast %cst_2 : f32 to vector<8x128xf32>
    %cst_3 = arith.constant 0.000000e+00 : f32
    %6 = vector.broadcast %cst_3 : f32 to vector<8x128xf32>
    %cst_4 = arith.constant 0.000000e+00 : f32
    %7 = vector.broadcast %cst_4 : f32 to vector<8x128xf32>
    %cst_5 = arith.constant 0.000000e+00 : f32
    %8 = vector.broadcast %cst_5 : f32 to vector<8x128xf32>
    %cst_6 = arith.constant 0.000000e+00 : f32
    %9 = vector.broadcast %cst_6 : f32 to vector<8x128xf32>
    %cst_7 = arith.constant 0.000000e+00 : f32
    %10 = vector.broadcast %cst_7 : f32 to vector<8x128xf32>
    %cst_8 = arith.constant 0.000000e+00 : f32
    %11 = vector.broadcast %cst_8 : f32 to vector<8x128xf32>
    %cst_9 = arith.constant 0.000000e+00 : f32
    %12 = vector.broadcast %cst_9 : f32 to vector<8x128xf32>
    %cst_10 = arith.constant 0.000000e+00 : f32
    %13 = vector.broadcast %cst_10 : f32 to vector<8x128xf32>
    %cst_11 = arith.constant 0.000000e+00 : f32
    %14 = vector.broadcast %cst_11 : f32 to vector<8x128xf32>
    %c0 = arith.constant 0 : index
    %c0_12 = arith.constant 0 : index
    %15 = vector.load %arg2[%c0, %c0_12] : memref<8x256xf32, #tpu.memory_space<vmem>>, vector<8x128xf32>
    %c0_13 = arith.constant 0 : index
    %c0_14 = arith.constant 0 : index
    %16 = vector.load %arg3[%c0_13, %c0_14] : memref<8x256xf32, #tpu.memory_space<vmem>>, vector<8x128xf32>
    %17 = arith.addf %3, %15 : vector<8x128xf32>
    %18 = arith.addf %4, %16 : vector<8x128xf32>
    %19 = arith.mulf %15, %15 : vector<8x128xf32>
    %20 = arith.addf %5, %19 : vector<8x128xf32>
    %21 = arith.mulf %16, %16 : vector<8x128xf32>
    %22 = arith.addf %6, %21 : vector<8x128xf32>
    %23 = arith.mulf %15, %16 : vector<8x128xf32>
    %24 = arith.addf %7, %23 : vector<8x128xf32>
    %25 = arith.subf %15, %16 : vector<8x128xf32>
    %26 = math.absf %25 : vector<8x128xf32>
    %27 = arith.addf %8, %26 : vector<8x128xf32>
    %c0_15 = arith.constant 0 : index
    %c128 = arith.constant 128 : index
    %28 = vector.load %arg2[%c0_15, %c128] : memref<8x256xf32, #tpu.memory_space<vmem>>, vector<8x128xf32>
    %c0_16 = arith.constant 0 : index
    %c128_17 = arith.constant 128 : index
    %29 = vector.load %arg3[%c0_16, %c128_17] : memref<8x256xf32, #tpu.memory_space<vmem>>, vector<8x128xf32>
    %30 = arith.addf %9, %28 : vector<8x128xf32>
    %31 = arith.addf %10, %29 : vector<8x128xf32>
    %32 = arith.mulf %28, %28 : vector<8x128xf32>
    %33 = arith.addf %11, %32 : vector<8x128xf32>
    %34 = arith.mulf %29, %29 : vector<8x128xf32>
    %35 = arith.addf %12, %34 : vector<8x128xf32>
    %36 = arith.mulf %28, %29 : vector<8x128xf32>
    %37 = arith.addf %13, %36 : vector<8x128xf32>
    %38 = arith.subf %28, %29 : vector<8x128xf32>
    %39 = math.absf %38 : vector<8x128xf32>
    %40 = arith.addf %14, %39 : vector<8x128xf32>
    %41 = arith.addf %17, %30 : vector<8x128xf32>
    %42 = arith.addf %18, %31 : vector<8x128xf32>
    %43 = arith.addf %20, %33 : vector<8x128xf32>
    %44 = arith.addf %22, %35 : vector<8x128xf32>
    %45 = arith.addf %24, %37 : vector<8x128xf32>
    %46 = arith.addf %27, %40 : vector<8x128xf32>
    %c0_18 = arith.constant 0 : index
    %c0_19 = arith.constant 0 : index
    %c0_20 = arith.constant 0 : index
    %c0_21 = arith.constant 0 : index
    %47 = vector.load %arg4[%c0_18, %c0_19, %c0_20, %c0_21] : memref<1x6x8x128xf32, #tpu.memory_space<vmem>>, vector<1x1x8x128xf32>
    %48 = vector.shape_cast %47 : vector<1x1x8x128xf32> to vector<8x128xf32>
    %49 = arith.addf %48, %41 : vector<8x128xf32>
    %c0_22 = arith.constant 0 : index
    %c0_23 = arith.constant 0 : index
    %c0_24 = arith.constant 0 : index
    %c0_25 = arith.constant 0 : index
    %50 = vector.load %arg4[%c0_22, %c0_23, %c0_24, %c0_25] : memref<1x6x8x128xf32, #tpu.memory_space<vmem>>, vector<1x1x8x128xf32>
    %51 = vector.shape_cast %50 : vector<1x1x8x128xf32> to vector<8x128xf32>
    %52 = vector.shape_cast %49 : vector<8x128xf32> to vector<1x1x8x128xf32>
    tpu.vector_store %arg4[%c0_22, %c0_23, %c0_24, %c0_25], %52 {strides = array<i32>} : memref<1x6x8x128xf32, #tpu.memory_space<vmem>>, vector<1x1x8x128xf32>,
    %c0_26 = arith.constant 0 : index
    %c1 = arith.constant 1 : index
    %c0_27 = arith.constant 0 : index
    %c0_28 = arith.constant 0 : index
    %53 = vector.load %arg4[%c0_26, %c1, %c0_27, %c0_28] : memref<1x6x8x128xf32, #tpu.memory_space<vmem>>, vector<1x1x8x128xf32>
    %54 = vector.shape_cast %53 : vector<1x1x8x128xf32> to vector<8x128xf32>
    %55 = arith.addf %54, %42 : vector<8x128xf32>
    %c0_29 = arith.constant 0 : index
    %c1_30 = arith.constant 1 : index
    %c0_31 = arith.constant 0 : index
    %c0_32 = arith.constant 0 : index
    %56 = vector.load %arg4[%c0_29, %c1_30, %c0_31, %c0_32] : memref<1x6x8x128xf32, #tpu.memory_space<vmem>>, vector<1x1x8x128xf32>
    %57 = vector.shape_cast %56 : vector<1x1x8x128xf32> to vector<8x128xf32>
    %58 = vector.shape_cast %55 : vector<8x128xf32> to vector<1x1x8x128xf32>
    tpu.vector_store %arg4[%c0_29, %c1_30, %c0_31, %c0_32], %58 {strides = array<i32>} : memref<1x6x8x128xf32, #tpu.memory_space<vmem>>, vector<1x1x8x128xf32>,
    %c0_33 = arith.constant 0 : index
    %c2 = arith.constant 2 : index
    %c0_34 = arith.constant 0 : index
    %c0_35 = arith.constant 0 : index
    %59 = vector.load %arg4[%c0_33, %c2, %c0_34, %c0_35] : memref<1x6x8x128xf32, #tpu.memory_space<vmem>>, vector<1x1x8x128xf32>
    %60 = vector.shape_cast %59 : vector<1x1x8x128xf32> to vector<8x128xf32>
    %61 = arith.addf %60, %43 : vector<8x128xf32>
    %c0_36 = arith.constant 0 : index
    %c2_37 = arith.constant 2 : index
    %c0_38 = arith.constant 0 : index
    %c0_39 = arith.constant 0 : index
    %62 = vector.load %arg4[%c0_36, %c2_37, %c0_38, %c0_39] : memref<1x6x8x128xf32, #tpu.memory_space<vmem>>, vector<1x1x8x128xf32>
    %63 = vector.shape_cast %62 : vector<1x1x8x128xf32> to vector<8x128xf32>
    %64 = vector.shape_cast %61 : vector<8x128xf32> to vector<1x1x8x128xf32>
    tpu.vector_store %arg4[%c0_36, %c2_37, %c0_38, %c0_39], %64 {strides = array<i32>} : memref<1x6x8x128xf32, #tpu.memory_space<vmem>>, vector<1x1x8x128xf32>,
    %c0_40 = arith.constant 0 : index
    %c3 = arith.constant 3 : index
    %c0_41 = arith.constant 0 : index
    %c0_42 = arith.constant 0 : index
    %65 = vector.load %arg4[%c0_40, %c3, %c0_41, %c0_42] : memref<1x6x8x128xf32, #tpu.memory_space<vmem>>, vector<1x1x8x128xf32>
    %66 = vector.shape_cast %65 : vector<1x1x8x128xf32> to vector<8x128xf32>
    %67 = arith.addf %66, %44 : vector<8x128xf32>
    %c0_43 = arith.constant 0 : index
    %c3_44 = arith.constant 3 : index
    %c0_45 = arith.constant 0 : index
    %c0_46 = arith.constant 0 : index
    %68 = vector.load %arg4[%c0_43, %c3_44, %c0_45, %c0_46] : memref<1x6x8x128xf32, #tpu.memory_space<vmem>>, vector<1x1x8x128xf32>
    %69 = vector.shape_cast %68 : vector<1x1x8x128xf32> to vector<8x128xf32>
    %70 = vector.shape_cast %67 : vector<8x128xf32> to vector<1x1x8x128xf32>
    tpu.vector_store %arg4[%c0_43, %c3_44, %c0_45, %c0_46], %70 {strides = array<i32>} : memref<1x6x8x128xf32, #tpu.memory_space<vmem>>, vector<1x1x8x128xf32>,
    %c0_47 = arith.constant 0 : index
    %c4 = arith.constant 4 : index
    %c0_48 = arith.constant 0 : index
    %c0_49 = arith.constant 0 : index
    %71 = vector.load %arg4[%c0_47, %c4, %c0_48, %c0_49] : memref<1x6x8x128xf32, #tpu.memory_space<vmem>>, vector<1x1x8x128xf32>
    %72 = vector.shape_cast %71 : vector<1x1x8x128xf32> to vector<8x128xf32>
    %73 = arith.addf %72, %45 : vector<8x128xf32>
    %c0_50 = arith.constant 0 : index
    %c4_51 = arith.constant 4 : index
    %c0_52 = arith.constant 0 : index
    %c0_53 = arith.constant 0 : index
    %74 = vector.load %arg4[%c0_50, %c4_51, %c0_52, %c0_53] : memref<1x6x8x128xf32, #tpu.memory_space<vmem>>, vector<1x1x8x128xf32>
    %75 = vector.shape_cast %74 : vector<1x1x8x128xf32> to vector<8x128xf32>
    %76 = vector.shape_cast %73 : vector<8x128xf32> to vector<1x1x8x128xf32>
    tpu.vector_store %arg4[%c0_50, %c4_51, %c0_52, %c0_53], %76 {strides = array<i32>} : memref<1x6x8x128xf32, #tpu.memory_space<vmem>>, vector<1x1x8x128xf32>,
    %c0_54 = arith.constant 0 : index
    %c5 = arith.constant 5 : index
    %c0_55 = arith.constant 0 : index
    %c0_56 = arith.constant 0 : index
    %77 = vector.load %arg4[%c0_54, %c5, %c0_55, %c0_56] : memref<1x6x8x128xf32, #tpu.memory_space<vmem>>, vector<1x1x8x128xf32>
    %78 = vector.shape_cast %77 : vector<1x1x8x128xf32> to vector<8x128xf32>
    %79 = arith.addf %78, %46 : vector<8x128xf32>
    %c0_57 = arith.constant 0 : index
    %c5_58 = arith.constant 5 : index
    %c0_59 = arith.constant 0 : index
    %c0_60 = arith.constant 0 : index
    %80 = vector.load %arg4[%c0_57, %c5_58, %c0_59, %c0_60] : memref<1x6x8x128xf32, #tpu.memory_space<vmem>>, vector<1x1x8x128xf32>
    %81 = vector.shape_cast %80 : vector<1x1x8x128xf32> to vector<8x128xf32>
    %82 = vector.shape_cast %79 : vector<8x128xf32> to vector<1x1x8x128xf32>
    tpu.vector_store %arg4[%c0_57, %c5_58, %c0_59, %c0_60], %82 {strides = array<i32>} : memref<1x6x8x128xf32, #tpu.memory_space<vmem>>, vector<1x1x8x128xf32>,
    return
  }
  func.func @transform_0(%arg0: i32, %arg1: i32) -> (i32, i32) {
    %c1_i32 = arith.constant 1 : i32
    %0 = arith.muli %arg0, %c1_i32 : i32
    %1 = arith.addi %0, %arg1 : i32
    %c0_i32 = arith.constant 0 : i32
    %c0_i32_0 = arith.constant 0 : i32
    return %c0_i32, %1 : i32, i32
  }
  func.func @transform_1(%arg0: i32, %arg1: i32) -> (i32, i32) {
    %c1_i32 = arith.constant 1 : i32
    %0 = arith.muli %arg0, %c1_i32 : i32
    %1 = arith.addi %0, %arg1 : i32
    %c0_i32 = arith.constant 0 : i32
    %c0_i32_0 = arith.constant 0 : i32
    return %c0_i32, %1 : i32, i32
  }
  func.func @transform_2(%arg0: i32, %arg1: i32) -> (i32, i32, i32, i32) {
    %c0_i32 = arith.constant 0 : i32
    %c0_i32_0 = arith.constant 0 : i32
    %c0_i32_1 = arith.constant 0 : i32
    %c0_i32_2 = arith.constant 0 : i32
    return %arg0, %c0_i32, %c0_i32_0, %c0_i32_1 : i32, i32, i32, i32
  }
}

</mosaic_0001>

<bundles_post_ra>
// kernel: tpu_custom_call.1
= control target key start
LH: loop header
LB: loop body
LE: loop exit
PB: predicated region body
PF: predicated region fallthrough
CT: control target
= control target key end

     0   :  { %7 = vsyncpa [#allocation3], 0  ;;  %s250_s0 = inlined_call_operand.hbm [shape: f32[8,256], index: 0, kind: input, shape index: {}]   ;;  %s251_s1 = inlined_call_operand.hbm [shape: f32[8,256], index: 1, kind: input, shape index: {}]   ;;  %s252_s2 = inlined_call_operand.hbm [shape: f32[1,6,8,128], index: 2, kind: output, shape index: {}]  }
   0x1   :  { %8 = vsyncpa [#allocation6], 0 }
   0x2   :  { %9 = vsyncpa [#allocation4], 0  ;;  %s19_s11 = sshll.u32 %s250_s0, 4  ;;  %s221_s12 = smov [#allocation2]   ;;  %s20_s11 = int_to_ptr.hbm [resolvable:$true] %s19_s11 }
   0x3   :  { %s21_s13 = sshll.u32 %s221_s12, 4  ;;  %s34_s16 = sshll.u32 %s251_s1, 4  ;;  %s22_s13 = int_to_ptr.vmem [resolvable:$true] %s21_s13  ;;  %s35_s16 = int_to_ptr.hbm [resolvable:$true] %s34_s16 }
   0x4   :  { %24 = dma.hbm_to_vmem [thread:$0]  %s20_s11, 256, %s22_s13, [#allocation3]  }
   0x5   :  { %s222_s17 = smov [#allocation5]  }
   0x6   :  { %s36_s18 = sshll.u32 %s222_s17, 4  ;;  %s37_s18 = int_to_ptr.vmem [resolvable:$true] %s36_s18 }
   0x7   :  { %39 = dma.hbm_to_vmem [thread:$0]  %s35_s16, 256, %s37_s18, [#allocation6]  }
   0x8   :  { %215 = dma.done.wait [#allocation3], 256  }
   0x9   :  { %216 = vsyncadd [#allocation3], 4294967040 }
   0xa   :  { %217 = dma.done.wait [#allocation6], 256  }
   0xb   :  { %218 = vsyncadd [#allocation6], 4294967040  ;;  %v62_v0 = vld [vmem:[#allocation2] sm:$0xff]  ;;  %v75_v1 = vld [vmem:[#allocation2 + $0x8] sm:$0xff]  ;;  %s123_s19 = sshll.u32 %s252_s2, 4  ;;  %s223_s20 = smov [#allocation7]   ;;  %s124_s19 = int_to_ptr.hbm [resolvable:$true] %s123_s19 }
   0xc   :  { %v63_v2 = vld [vmem:[#allocation5] sm:$0xff]  ;;  %v88_v3 = vadd.f32 %v75_v1, %v62_v0  ;;  %v76_v4 = vld [vmem:[#allocation5 + $0x8] sm:$0xff]  ;;  %v66_v5 = vmul.f32 %v62_v0, %v62_v0  ;;  %v79_v6 = vmul.f32 %v75_v1, %v75_v1  ;;  %s121_s21 = sshll.u32 %s223_s20, 4  ;;  %s224_s22 = smov 128   ;;  %s122_s21 = int_to_ptr.vmem [resolvable:$true] %s121_s21 }
   0xd   :  { %v68_v7 = vmul.f32 %v63_v2, %v63_v2  ;;  %v89_v8 = vadd.f32 %v76_v4, %v63_v2  ;;  %v81_v9 = vmul.f32 %v76_v4, %v76_v4  ;;  %v70_v10 = vmul.f32 %v63_v2, %v62_v0  ;;  %s225_s23 = smov 8  }
   0xe   :  { %v83_v11 = vmul.f32 %v76_v4, %v75_v1  ;;  %v90_v12 = vadd.f32 %v79_v6, %v66_v5  ;;  %v72_v13 = vsub.f32 %v62_v0, %v63_v2  ;;  %v85_v14 = vsub.f32 %v75_v1, %v76_v4  ;;  %96 = vst [vmem:[#allocation7] sm:$0xff] %v88_v3 }
   0xf   :  { %v91_v15 = vadd.f32 %v81_v9, %v68_v7  ;;  %100 = vst [vmem:[#allocation7 + $0x8] sm:$0xff] %v89_v8 }
  0x10   :  { %v92_v16 = vadd.f32 %v83_v11, %v70_v10  ;;  %v73_v17 = vand.u32 2147483647, %v72_v13  ;;  %v86_v18 = vand.u32 2147483647, %v85_v14  ;;  %104 = vst [vmem:[#allocation7 + $0x10] sm:$0xff] %v90_v12 }
  0x11   :  { %108 = vst [vmem:[#allocation7 + $0x18] sm:$0xff] %v91_v15 }
  0x12   :  { %v93_v19 = vadd.f32 %v86_v18, %v73_v17  ;;  %112 = vst [vmem:[#allocation7 + $0x20] sm:$0xff] %v92_v16 }
  0x14   :  { %116 = vst [vmem:[#allocation7 + $0x28] sm:$0xff] %v93_v19 }
  0x15   :  { %129 = dma.vmem_to_hbm [thread:$0]  %s122_s21, 768, %s124_s19, [#allocation4], %s224_s22, %s224_s22, %s225_s23  }
  0x16   :  { %219 = dma.done.wait [#allocation4], 768  }
  0x17   :  { %220 = vsyncadd [#allocation4], 4294966528 }
  0x18   :  { %134 = vsyncpa [#allocation3], 1 }
  0x19   :  { %135 = vsyncpa [#allocation6], 1 }
  0x1a   :  { %136 = vsyncpa [#allocation4], 1 }

</bundles_post_ra>
